<compile_context>
chip_gen: v7x
topology: tpu7x:2x2x1
jax: 0.10.0
libtpu: 0.0.40
codegen_flags: <defaults>
</compile_context>

<pallas_src>
import jax
import jax.numpy as jnp
from jax import lax
from jax.experimental import pallas as pl
from jax.experimental.pallas import tpu as pltpu


def _round_up(x, m):
    return (x + m - 1) // m * m


def _device_kind():
    try:
        return jax.devices()[0].device_kind.lower()
    except Exception:  # pragma: no cover - defensive
        return ""


def _vmem_budget_bytes():
    # v7x: 64 MiB VMEM per TensorCore -> leave headroom.  v5e/v6e: 128 MiB.
    if "v7" in _device_kind():
        return 48 * 1024 * 1024
    return 100 * 1024 * 1024


def _pick_tile_b(B, tile_b):
    TB = min(tile_b, _round_up(B, 8))
    # v7x megacore: make sure the "parallel" batch axis has >= 2 tiles so the
    # grid actually shards across both TensorCores.
    if "v7" in _device_kind() and B > 16:
        while _round_up(B, TB) // TB < 2 and TB > 8:
            TB = _round_up(TB // 2, 8)
    return TB


# ---------------------------------------------------------------------------
# Resident-weights kernel: grid = (batch_tiles,); all weights live in VMEM.
# ---------------------------------------------------------------------------
def net1_resident_kernel(x_ref, w0_ref, b0_ref, w1_ref, w2_ref, b12_ref,
                         o_ref):
    # Stem: Linear(F, H) -> ReLU -> Dropout (identity in eval mode).
    h = jnp.dot(x_ref[...], w0_ref[...], preferred_element_type=jnp.float32)
    h = jnp.maximum(h + b0_ref[...], 0.0)
    # TODO(synk): dropout is identity (eval mode); training-mode dropout would
    # need pltpu.prng_seed / pltpu.prng_random_bits masking.

    num_blocks = w1_ref.shape[0]

    def block(blk, h):
        identity = h
        out = jnp.dot(identity.astype(jnp.bfloat16), w1_ref[blk],
                      preferred_element_type=jnp.float32)
        bpair = b12_ref[blk]                       # (2, H) f32
        out = jnp.maximum(out + bpair[0], 0.0)     # relu(linear1), dropout=id
        out = jnp.dot(out.astype(jnp.bfloat16), w2_ref[blk],
                      preferred_element_type=jnp.float32)
        out = out + bpair[1]                       # linear2
        return jnp.maximum(out + identity, 0.0)    # += identity; relu

    if num_blocks <= 16:
        for blk in range(num_blocks):              # static unroll, tiny loop
            h = block(blk, h)
    else:
        h = lax.fori_loop(0, num_blocks, block, h)

    o_ref[...] = h.astype(o_ref.dtype)


# ---------------------------------------------------------------------------
# Streamed-weights fallback kernel: grid = (batch_tiles, num_blocks).
# ---------------------------------------------------------------------------
def net1_stream_kernel(x_ref, w0_ref, b0_ref, w1_ref, w2_ref, b12_ref,
                       o_ref, h_ref):
    blk = pl.program_id(1)
    last = pl.num_programs(1) - 1

    @pl.when(blk == 0)
    def _():
        h0 = jnp.dot(x_ref[...], w0_ref[...],
                     preferred_element_type=jnp.float32)
        h_ref[...] = jnp.maximum(h0 + b0_ref[...], 0.0)
        # TODO(synk): dropout is identity (eval mode).

    identity = h_ref[...]                                      # f32 [TB, H]
    out = jnp.dot(identity.astype(jnp.bfloat16), w1_ref[0],
                  preferred_element_type=jnp.float32)
    bpair = b12_ref[blk]                                       # (2, H) f32
    out = jnp.maximum(out + bpair[0], 0.0)
    out = jnp.dot(out.astype(jnp.bfloat16), w2_ref[0],
                  preferred_element_type=jnp.float32)
    out = out + bpair[1]
    h_new = jnp.maximum(out + identity, 0.0)

    @pl.when(blk != last)          # skip the redundant store on the last block
    def _():
        h_ref[...] = h_new

    @pl.when(blk == last)
    def _():
        o_ref[...] = h_new.astype(o_ref.dtype)


# ---------------------------------------------------------------------------
# Wrapper
# ---------------------------------------------------------------------------
def net1_forward(x, params, *, num_blocks, tile_b=256, force_stream=False):
    """x: [B, num_features] f32.  params: pre-transposed ([in, out]) weights."""
    assert num_blocks >= 1
    B, F = x.shape
    H = params["w0"].shape[1]
    NB = num_blocks
    assert params["w1"].shape[0] == NB

    # bf16 activations/weights for MXU peak throughput; biases stay f32.
    xb = x.astype(jnp.bfloat16)
    w0 = params["w0"].astype(jnp.bfloat16)
    w1 = params["w1"].astype(jnp.bfloat16)
    w2 = params["w2"].astype(jnp.bfloat16)
    b0 = params["b0"].astype(jnp.float32).reshape(1, H)
    b12 = jnp.stack([params["b1"].reshape(NB, H),
                     params["b2"].reshape(NB, H)], axis=1)       # (NB, 2, H)

    # Lane-dense stem: zero-pad the feature dim to a multiple of 128 (the zero
    # rows of w0 contribute nothing).
    Fp = _round_up(F, 128)
    if Fp != F:
        xb = jnp.pad(xb, ((0, 0), (0, Fp - F)))
        w0 = jnp.pad(w0, ((0, Fp - F), (0, 0)))

    TB = _pick_tile_b(B, tile_b)
    Bp = _round_up(B, TB)
    if Bp != B:
        xb = jnp.pad(xb, ((0, Bp - B), (0, 0)))
    n_tiles = Bp // TB

    # VMEM budget: resident path keeps every weight in VMEM exactly once.
    budget = _vmem_budget_bytes()
    bytes_blocks = NB * 2 * H * H * 2                 # w1 + w2, bf16, resident
    bytes_w0 = Fp * H * 2
    bytes_bias = (H + NB * 2 * H) * 4
    bytes_x_db = 2 * TB * Fp * 2                      # double-buffered x tiles
    bytes_out_db = 2 * TB * H * 4                     # double-buffered out
    bytes_tmp = 6 * TB * H * 4                        # compute-temp margin
    resident_need = (bytes_blocks + bytes_w0 + bytes_bias
                     + bytes_x_db + bytes_out_db + bytes_tmp)

    use_resident = (not force_stream) and (resident_need <= budget)
    # TODO(synk): for very large H (>= ~2048) the streamed (H, H) blocks should
    # additionally be N-tiled to stay within VMEM; not needed at these shapes.

    resident_vmem = pl.BlockSpec(memory_space=pltpu.MemorySpace.VMEM)

    if use_resident:
        grid = (n_tiles,)
        in_specs = [
            pl.BlockSpec((TB, Fp), lambda i: (i, 0)),   # x tile (pipelined)
            resident_vmem,                              # w0   (resident)
            resident_vmem,                              # b0   (resident)
            resident_vmem,                              # w1   (all blocks)
            resident_vmem,                              # w2   (all blocks)
            resident_vmem,                              # b1/b2 stacked
        ]
        out_specs = pl.BlockSpec((TB, H), lambda i: (i, 0))
        scratch = []
        kernel = net1_resident_kernel
        semantics = ("parallel",)
    else:
        grid = (n_tiles, NB)
        in_specs = [
            pl.BlockSpec((TB, Fp), lambda i, blk: (i, 0)),      # x tile
            resident_vmem,                                       # w0
            resident_vmem,                                       # b0
            pl.BlockSpec((1, H, H), lambda i, blk: (blk, 0, 0)),  # w1[blk]
            pl.BlockSpec((1, H, H), lambda i, blk: (blk, 0, 0)),  # w2[blk]
            resident_vmem,                                       # b1/b2 stacked
        ]
        out_specs = pl.BlockSpec((TB, H), lambda i, blk: (i, 0))
        scratch = [pltpu.VMEM((TB, H), jnp.float32)]
        kernel = net1_stream_kernel
        semantics = ("parallel", "arbitrary")

    out = pl.pallas_call(
        kernel,
        out_shape=jax.ShapeDtypeStruct((Bp, H), jnp.float32),
        grid=grid,
        in_specs=in_specs,
        out_specs=out_specs,
        scratch_shapes=scratch,
        compiler_params=pltpu.CompilerParams(
            dimension_semantics=semantics,
            vmem_limit_bytes=int(budget)),
    )(xb, w0, b0, w1, w2, b12)
    return out[:B]


# ---------------------------------------------------------------------------
# Params / references
# ---------------------------------------------------------------------------
def init_params(key, num_features, num_neurons, num_blocks):
    """Mimics nn.Linear default init U(-1/sqrt(fan_in), 1/sqrt(fan_in)).
    Weights stored pre-transposed to [in, out]."""
    ks = jax.random.split(key, 6)
    lim0 = 1.0 / jnp.sqrt(num_features)
    limh = 1.0 / jnp.sqrt(num_neurons)
    return {
        "w0": jax.random.uniform(ks[0], (num_features, num_neurons),
                                 jnp.float32, -lim0, lim0),
        "b0": jax.random.uniform(ks[1], (1, num_neurons),
                                 jnp.float32, -lim0, lim0),
        "w1": jax.random.uniform(ks[2], (num_blocks, num_neurons, num_neurons),
                                 jnp.float32, -limh, limh),
        "b1": jax.random.uniform(ks[3], (num_blocks, num_neurons),
                                 jnp.float32, -limh, limh),
        "w2": jax.random.uniform(ks[4], (num_blocks, num_neurons, num_neurons),
                                 jnp.float32, -limh, limh),
        "b2": jax.random.uniform(ks[5], (num_blocks, num_neurons),
                                 jnp.float32, -limh, limh),
    }


def reference_forward_f32(x, params, num_blocks):
    """Pure-JAX f32 reference mirroring the PyTorch forward (eval mode)."""
    h = jnp.maximum(x @ params["w0"] + params["b0"], 0.0)
    for blk in range(num_blocks):
        identity = h
        out = jnp.maximum(h @ params["w1"][blk] + params["b1"][blk], 0.0)
        out = out @ params["w2"][blk] + params["b2"][blk]
        h = jnp.maximum(out + identity, 0.0)
    return h


def reference_forward_bf16(x, params, num_blocks):
    """Reference mirroring the kernel arithmetic: bf16 matmuls, f32 accum."""
    def mm(a, w):
        return jnp.dot(a.astype(jnp.bfloat16), w.astype(jnp.bfloat16),
                       preferred_element_type=jnp.float32)
    h = jnp.maximum(mm(x, params["w0"]) + params["b0"], 0.0)
    for blk in range(num_blocks):
        identity = h
        out = jnp.maximum(mm(h, params["w1"][blk]) + params["b1"][blk], 0.0)
        out = mm(out, params["w2"][blk]) + params["b2"][blk]
        h = jnp.maximum(out + identity, 0.0)
    return h


if __name__ == "__main__":
    # Small shapes consistent with Net1(num_features, num_residual_blocks,
    # num_neurons, dropout_p).
    B = 8
    NUM_FEATURES = 32
    NUM_NEURONS = 128
    NUM_BLOCKS = 2

    key = jax.random.PRNGKey(0)
    kx, kp = jax.random.split(key)
    x = jax.random.normal(kx, (B, NUM_FEATURES), jnp.float32)
    params = init_params(kp, NUM_FEATURES, NUM_NEURONS, NUM_BLOCKS)

    # Primary (resident-weights) path.
    out = jax.block_until_ready(net1_forward(x, params, num_blocks=NUM_BLOCKS))
    assert out.shape == (B, NUM_NEURONS)

    # Streamed-weights fallback path (what large num_blocks * H^2 would use).
    out_stream = jax.block_until_ready(
        net1_forward(x, params, num_blocks=NUM_BLOCKS, force_stream=True))
    assert out_stream.shape == (B, NUM_NEURONS)

    # Tight check against the bf16-matmul / f32-accumulate arithmetic the
    # kernel performs, plus a loose check against the pure-f32 PyTorch math.
    ref_bf16 = reference_forward_bf16(x, params, NUM_BLOCKS)
    ref_f32 = reference_forward_f32(x, params, NUM_BLOCKS)
    assert jnp.allclose(out, ref_bf16, atol=1e-3, rtol=1e-3), \
        "resident path mismatch vs bf16-emulated reference"
    assert jnp.allclose(out_stream, ref_bf16, atol=1e-3, rtol=1e-3), \
        "streamed path mismatch vs bf16-emulated reference"
    assert jnp.allclose(out, ref_f32, atol=5e-2, rtol=5e-2), \
        "mismatch vs f32 reference (beyond bf16 tolerance)"

    print("KERNEL_OK")
</pallas_src>

<mosaic_0001>
module attributes {stable_mosaic.version = 11 : i64} {
  func.func @net1_resident_kernel(%arg0: i32, %arg1: memref<8x128xbf16, #tpu.memory_space<vmem>>, %arg2: memref<128x128xbf16, #tpu.memory_space<vmem>>, %arg3: memref<1x128xf32, #tpu.memory_space<vmem>>, %arg4: memref<2x128x128xbf16, #tpu.memory_space<vmem>>, %arg5: memref<2x128x128xbf16, #tpu.memory_space<vmem>>, %arg6: memref<2x2x128xf32, #tpu.memory_space<vmem>>, %arg7: memref<8x128xf32, #tpu.memory_space<vmem>>) attributes {dimension_semantics = [#tpu.dimension_semantics<parallel>], iteration_bounds = array<i64: 1>, scalar_prefetch = 0 : i64, scratch_operands = 0 : i64, tpu.core_type = #tpu.core_type<tc>, window_params = [{transform_indices = @transform_0, window_bounds = array<i64: 8, 128>}, {pipeline_mode = #tpu.pipeline_mode<synchronous>, transform_indices = @transform_1, window_bounds = array<i64: 128, 128>}, {pipeline_mode = #tpu.pipeline_mode<synchronous>, transform_indices = @transform_2, window_bounds = array<i64: 1, 128>}, {pipeline_mode = #tpu.pipeline_mode<synchronous>, transform_indices = @transform_3, window_bounds = array<i64: 2, 128, 128>}, {pipeline_mode = #tpu.pipeline_mode<synchronous>, transform_indices = @transform_4, window_bounds = array<i64: 2, 128, 128>}, {pipeline_mode = #tpu.pipeline_mode<synchronous>, transform_indices = @transform_5, window_bounds = array<i64: 2, 2, 128>}, {transform_indices = @transform_6, window_bounds = array<i64: 8, 128>}]} {
    %c0 = arith.constant 0 : index
    %c0_0 = arith.constant 0 : index
    %0 = vector.load %arg1[%c0, %c0_0] : memref<8x128xbf16, #tpu.memory_space<vmem>>, vector<8x128xbf16>
    %c0_1 = arith.constant 0 : index
    %c0_2 = arith.constant 0 : index
    %1 = vector.load %arg2[%c0_1, %c0_2] : memref<128x128xbf16, #tpu.memory_space<vmem>>, vector<128x128xbf16>
    %cst = arith.constant dense<0.000000e+00> : vector<8x128xf32>
    %2 = tpu.matmul %0, %1, %cst {dimension_numbers = #tpu.dot_dimension_numbers<[1], [0], [0], [1], [0, 0, 1, 1], [], []>} : vector<8x128xbf16>, vector<128x128xbf16>, vector<8x128xf32> -> vector<8x128xf32>
    %c0_3 = arith.constant 0 : index
    %c0_4 = arith.constant 0 : index
    %3 = vector.load %arg3[%c0_3, %c0_4] : memref<1x128xf32, #tpu.memory_space<vmem>>, vector<1x128xf32>
    %4 = vector.broadcast %3 : vector<1x128xf32> to vector<8x128xf32>
    %5 = arith.addf %2, %4 : vector<8x128xf32>
    %cst_5 = arith.constant 0.000000e+00 : f32
    %6 = vector.broadcast %cst_5 : f32 to vector<8x128xf32>
    %7 = arith.maximumf %5, %6 : vector<8x128xf32>
    %8 = arith.truncf %7 : vector<8x128xf32> to vector<8x128xbf16>
    %c0_6 = arith.constant 0 : index
    %c0_7 = arith.constant 0 : index
    %c0_8 = arith.constant 0 : index
    %9 = vector.load %arg4[%c0_6, %c0_7, %c0_8] : memref<2x128x128xbf16, #tpu.memory_space<vmem>>, vector<1x128x128xbf16>
    %10 = vector.shape_cast %9 : vector<1x128x128xbf16> to vector<128x128xbf16>
    %cst_9 = arith.constant dense<0.000000e+00> : vector<8x128xf32>
    %11 = tpu.matmul %8, %10, %cst_9 {dimension_numbers = #tpu.dot_dimension_numbers<[1], [0], [0], [1], [0, 0, 1, 1], [], []>} : vector<8x128xbf16>, vector<128x128xbf16>, vector<8x128xf32> -> vector<8x128xf32>
    %c0_10 = arith.constant 0 : index
    %c0_11 = arith.constant 0 : index
    %c0_12 = arith.constant 0 : index
    %12 = vector.load %arg6[%c0_10, %c0_11, %c0_12] : memref<2x2x128xf32, #tpu.memory_space<vmem>>, vector<1x2x128xf32>
    %13 = vector.shape_cast %12 : vector<1x2x128xf32> to vector<2x128xf32>
    %14 = vector.extract_strided_slice %13 {offsets = [0, 0], sizes = [1, 128], strides = [1, 1]} : vector<2x128xf32> to vector<1x128xf32>
    %15 = vector.shape_cast %14 : vector<1x128xf32> to vector<128xf32>
    %16 = vector.shape_cast %15 : vector<128xf32> to vector<1x128xf32>
    %17 = vector.broadcast %16 : vector<1x128xf32> to vector<8x128xf32>
    %18 = arith.addf %11, %17 : vector<8x128xf32>
    %cst_13 = arith.constant 0.000000e+00 : f32
    %19 = vector.broadcast %cst_13 : f32 to vector<8x128xf32>
    %20 = arith.maximumf %18, %19 : vector<8x128xf32>
    %21 = arith.truncf %20 : vector<8x128xf32> to vector<8x128xbf16>
    %c0_14 = arith.constant 0 : index
    %c0_15 = arith.constant 0 : index
    %c0_16 = arith.constant 0 : index
    %22 = vector.load %arg5[%c0_14, %c0_15, %c0_16] : memref<2x128x128xbf16, #tpu.memory_space<vmem>>, vector<1x128x128xbf16>
    %23 = vector.shape_cast %22 : vector<1x128x128xbf16> to vector<128x128xbf16>
    %cst_17 = arith.constant dense<0.000000e+00> : vector<8x128xf32>
    %24 = tpu.matmul %21, %23, %cst_17 {dimension_numbers = #tpu.dot_dimension_numbers<[1], [0], [0], [1], [0, 0, 1, 1], [], []>} : vector<8x128xbf16>, vector<128x128xbf16>, vector<8x128xf32> -> vector<8x128xf32>
    %25 = vector.extract_strided_slice %13 {offsets = [1, 0], sizes = [1, 128], strides = [1, 1]} : vector<2x128xf32> to vector<1x128xf32>
    %26 = vector.shape_cast %25 : vector<1x128xf32> to vector<128xf32>
    %27 = vector.shape_cast %26 : vector<128xf32> to vector<1x128xf32>
    %28 = vector.broadcast %27 : vector<1x128xf32> to vector<8x128xf32>
    %29 = arith.addf %24, %28 : vector<8x128xf32>
    %30 = arith.addf %29, %7 : vector<8x128xf32>
    %cst_18 = arith.constant 0.000000e+00 : f32
    %31 = vector.broadcast %cst_18 : f32 to vector<8x128xf32>
    %32 = arith.maximumf %30, %31 : vector<8x128xf32>
    %33 = arith.truncf %32 : vector<8x128xf32> to vector<8x128xbf16>
    %c1 = arith.constant 1 : index
    %c0_19 = arith.constant 0 : index
    %c0_20 = arith.constant 0 : index
    %34 = vector.load %arg4[%c1, %c0_19, %c0_20] : memref<2x128x128xbf16, #tpu.memory_space<vmem>>, vector<1x128x128xbf16>
    %35 = vector.shape_cast %34 : vector<1x128x128xbf16> to vector<128x128xbf16>
    %cst_21 = arith.constant dense<0.000000e+00> : vector<8x128xf32>
    %36 = tpu.matmul %33, %35, %cst_21 {dimension_numbers = #tpu.dot_dimension_numbers<[1], [0], [0], [1], [0, 0, 1, 1], [], []>} : vector<8x128xbf16>, vector<128x128xbf16>, vector<8x128xf32> -> vector<8x128xf32>
    %c1_22 = arith.constant 1 : index
    %c0_23 = arith.constant 0 : index
    %c0_24 = arith.constant 0 : index
    %37 = vector.load %arg6[%c1_22, %c0_23, %c0_24] : memref<2x2x128xf32, #tpu.memory_space<vmem>>, vector<1x2x128xf32>
    %38 = vector.shape_cast %37 : vector<1x2x128xf32> to vector<2x128xf32>
    %39 = vector.extract_strided_slice %38 {offsets = [0, 0], sizes = [1, 128], strides = [1, 1]} : vector<2x128xf32> to vector<1x128xf32>
    %40 = vector.shape_cast %39 : vector<1x128xf32> to vector<128xf32>
    %41 = vector.shape_cast %40 : vector<128xf32> to vector<1x128xf32>
    %42 = vector.broadcast %41 : vector<1x128xf32> to vector<8x128xf32>
    %43 = arith.addf %36, %42 : vector<8x128xf32>
    %cst_25 = arith.constant 0.000000e+00 : f32
    %44 = vector.broadcast %cst_25 : f32 to vector<8x128xf32>
    %45 = arith.maximumf %43, %44 : vector<8x128xf32>
    %46 = arith.truncf %45 : vector<8x128xf32> to vector<8x128xbf16>
    %c1_26 = arith.constant 1 : index
    %c0_27 = arith.constant 0 : index
    %c0_28 = arith.constant 0 : index
    %47 = vector.load %arg5[%c1_26, %c0_27, %c0_28] : memref<2x128x128xbf16, #tpu.memory_space<vmem>>, vector<1x128x128xbf16>
    %48 = vector.shape_cast %47 : vector<1x128x128xbf16> to vector<128x128xbf16>
    %cst_29 = arith.constant dense<0.000000e+00> : vector<8x128xf32>
    %49 = tpu.matmul %46, %48, %cst_29 {dimension_numbers = #tpu.dot_dimension_numbers<[1], [0], [0], [1], [0, 0, 1, 1], [], []>} : vector<8x128xbf16>, vector<128x128xbf16>, vector<8x128xf32> -> vector<8x128xf32>
    %50 = vector.extract_strided_slice %38 {offsets = [1, 0], sizes = [1, 128], strides = [1, 1]} : vector<2x128xf32> to vector<1x128xf32>
    %51 = vector.shape_cast %50 : vector<1x128xf32> to vector<128xf32>
    %52 = vector.shape_cast %51 : vector<128xf32> to vector<1x128xf32>
    %53 = vector.broadcast %52 : vector<1x128xf32> to vector<8x128xf32>
    %54 = arith.addf %49, %53 : vector<8x128xf32>
    %55 = arith.addf %54, %32 : vector<8x128xf32>
    %cst_30 = arith.constant 0.000000e+00 : f32
    %56 = vector.broadcast %cst_30 : f32 to vector<8x128xf32>
    %57 = arith.maximumf %55, %56 : vector<8x128xf32>
    %c0_31 = arith.constant 0 : index
    %c0_32 = arith.constant 0 : index
    %58 = vector.load %arg7[%c0_31, %c0_32] : memref<8x128xf32, #tpu.memory_space<vmem>>, vector<8x128xf32>
    tpu.vector_store %arg7[%c0_31, %c0_32], %57 {strides = array<i32>} : memref<8x128xf32, #tpu.memory_space<vmem>>, vector<8x128xf32>,
    return
  }
  func.func @transform_0(%arg0: i32) -> (i32, i32) {
    %c0_i32 = arith.constant 0 : i32
    %c0_i32_0 = arith.constant 0 : i32
    return %arg0, %c0_i32 : i32, i32
  }
  func.func @transform_1(%arg0: i32) -> (i32, i32) {
    %c0_i32 = arith.constant 0 : i32
    %c0_i32_0 = arith.constant 0 : i32
    %c0_i32_1 = arith.constant 0 : i32
    return %c0_i32, %c0_i32_0 : i32, i32
  }
  func.func @transform_2(%arg0: i32) -> (i32, i32) {
    %c0_i32 = arith.constant 0 : i32
    %c0_i32_0 = arith.constant 0 : i32
    %c0_i32_1 = arith.constant 0 : i32
    return %c0_i32, %c0_i32_0 : i32, i32
  }
  func.func @transform_3(%arg0: i32) -> (i32, i32, i32) {
    %c0_i32 = arith.constant 0 : i32
    %c0_i32_0 = arith.constant 0 : i32
    %c0_i32_1 = arith.constant 0 : i32
    %c0_i32_2 = arith.constant 0 : i32
    return %c0_i32, %c0_i32_0, %c0_i32_1 : i32, i32, i32
  }
  func.func @transform_4(%arg0: i32) -> (i32, i32, i32) {
    %c0_i32 = arith.constant 0 : i32
    %c0_i32_0 = arith.constant 0 : i32
    %c0_i32_1 = arith.constant 0 : i32
    %c0_i32_2 = arith.constant 0 : i32
    return %c0_i32, %c0_i32_0, %c0_i32_1 : i32, i32, i32
  }
  func.func @transform_5(%arg0: i32) -> (i32, i32, i32) {
    %c0_i32 = arith.constant 0 : i32
    %c0_i32_0 = arith.constant 0 : i32
    %c0_i32_1 = arith.constant 0 : i32
    %c0_i32_2 = arith.constant 0 : i32
    return %c0_i32, %c0_i32_0, %c0_i32_1 : i32, i32, i32
  }
  func.func @transform_6(%arg0: i32) -> (i32, i32) {
    %c0_i32 = arith.constant 0 : i32
    %c0_i32_0 = arith.constant 0 : i32
    return %arg0, %c0_i32 : i32, i32
  }
}

</mosaic_0001>

<bundles_post_ra>
// kernel: tpu_custom_call.1
= control target key start
LH: loop header
LB: loop body
LE: loop exit
PB: predicated region body
PF: predicated region fallthrough
CT: control target
= control target key end

     0   :  { %11 = vsyncpa [#allocation3], 0  ;;  %s1285_s0 = inlined_call_operand.hbm [shape: bf16[8,128], index: 0, kind: input, shape index: {}]   ;;  %s1286_s1 = inlined_call_operand.hbm [shape: bf16[128,128], index: 1, kind: input, shape index: {}]   ;;  %s1287_s2 = inlined_call_operand.hbm [shape: f32[1,128], index: 2, kind: input, shape index: {}]   ;;  %s1288_s3 = inlined_call_operand.hbm [shape: bf16[2,128,128], index: 3, kind: input, shape index: {}]   ;;  %s1289_s4 = inlined_call_operand.hbm [shape: bf16[2,128,128], index: 4, kind: input, shape index: {}]   ;;  %s1290_s5 = inlined_call_operand.hbm [shape: f32[2,2,128], index: 5, kind: input, shape index: {}]   ;;  %s1291_s6 = inlined_call_operand.hbm [shape: f32[8,128], index: 6, kind: output, shape index: {}]  }
   0x1   :  { %12 = vsyncpa [#allocation6], 0 }
   0x2   :  { %13 = vsyncpa [#allocation9], 0 }
   0x3   :  { %14 = vsyncpa [#allocation12], 0 }
   0x4   :  { %15 = vsyncpa [#allocation4], 0  ;;  %s1085_s21 = smov [#allocation5]   ;;  %s921_s25 = scalar_lea.hbm %s1286_s1, 1024 }
   0x5   :  { %s31_s22 = sshll.u32 %s1085_s21, 4  ;;  %p922_p0 = scmp.ne.s32.totalorder %s1286_s1, %s921_s25  ;;  %s32_s22 = int_to_ptr.vmem [resolvable:$true] %s31_s22 }
   0x6   :  { %p925_p1 = scmp.lt.u32.totalorder %s921_s25, %s1286_s1 }
   0x8   :  { %p927_p2 = pnand %p925_p1, %p922_p0 }
   0xa   :  { %930 = shalt.err (!%p927_p2)
}
   0xb   :  { %s931_s30 = scalar_lea.vmem %s32_s22, 1024  ;;  %p936_p4 = scmp.lt.s32.totalorder %s32_s22, %s32_s22 }
   0xc   :  { %p932_p3 = scmp.ne.s32.totalorder %s32_s22, %s931_s30  ;;  %p937_p5 = scmp.lt.s32.totalorder %s931_s30, %s931_s30 }
   0xe   :  { %p938_p6 = por %p937_p5, %p936_p4 }
  0x10   :  { %p939_p7 = pnand %p938_p6, %p932_p3 }
  0x12   :  { %942 = shalt.err (!%p939_p7)
}
  0x13   :  { %s1086_s7 = smov 64   ;;  %s1087_s8 = smov 4  }
  0x14   :  { %37 = dma.hbm_to_vmem [thread:$0]  %s1286_s1, 1024, %s32_s22, [#allocation6], %s1086_s7, %s1086_s7, %s1087_s8  }
  0x15   :  { %s1088_s11 = smov [#allocation8]   ;;  %s1089_s13 = smov [#allocation2]  }
  0x16   :  { %s53_s12 = sshll.u32 %s1088_s11, 4  ;;  %s22_s14 = sshll.u32 %s1089_s13, 4  ;;  %s54_s12 = int_to_ptr.vmem [resolvable:$true] %s53_s12  ;;  %s23_s14 = int_to_ptr.vmem [resolvable:$true] %s22_s14 }
  0x17   :  { %s943_s17 = scalar_lea.hbm %s1288_s3, 2048 }
  0x18   :  { %p944_p8 = scmp.ne.s32.totalorder %s1288_s3, %s943_s17  ;;  %p947_p9 = scmp.lt.u32.totalorder %s943_s17, %s1288_s3 }
  0x1a   :  { %p949_p10 = pnand %p947_p9, %p944_p8 }
  0x1c   :  { %952 = shalt.err (!%p949_p10)
}
  0x1d   :  { %s953_s1 = scalar_lea.vmem %s54_s12, 2048  ;;  %p958_p12 = scmp.lt.s32.totalorder %s54_s12, %s54_s12 }
  0x1e   :  { %p954_p11 = scmp.ne.s32.totalorder %s54_s12, %s953_s1  ;;  %p959_p13 = scmp.lt.s32.totalorder %s953_s1, %s953_s1 }
  0x20   :  { %p960_p0 = por %p959_p13, %p958_p12 }
  0x22   :  { %p961_p1 = pnand %p960_p0, %p954_p11 }
  0x24   :  { %964 = shalt.err (!%p961_p1)
}
  0x25   :  { %59 = dma.hbm_to_vmem [thread:$0]  %s1288_s3, 2048, %s54_s12, [#allocation9], %s1086_s7, %s1086_s7, %s1087_s8  }
  0x26   :  { %s965_s26 = scalar_lea.hbm %s1285_s0, 64 }
  0x27   :  { %p966_p2 = scmp.ne.s32.totalorder %s1285_s0, %s965_s26  ;;  %p969_p3 = scmp.lt.u32.totalorder %s965_s26, %s1285_s0 }
  0x29   :  { %p971_p4 = pnand %p969_p3, %p966_p2 }
  0x2b   :  { %974 = shalt.err (!%p971_p4)
}
  0x2c   :  { %s975_s9 = scalar_lea.vmem %s23_s14, 64  ;;  %p980_p6 = scmp.lt.s32.totalorder %s23_s14, %s23_s14 }
  0x2d   :  { %p976_p5 = scmp.ne.s32.totalorder %s23_s14, %s975_s9  ;;  %p981_p7 = scmp.lt.s32.totalorder %s975_s9, %s975_s9 }
  0x2f   :  { %p982_p8 = por %p981_p7, %p980_p6 }
  0x31   :  { %p983_p9 = pnand %p982_p8, %p976_p5 }
  0x33   :  { %986 = shalt.err (!%p983_p9)
}
  0x34   :  { %25 = dma.hbm_to_vmem [thread:$0]  %s1285_s0, 64, %s23_s14, [#allocation3]  }
  0x35   :  { %s1090_s11 = smov [#allocation7]   ;;  %s1091_s13 = smov [#allocation10]  }
  0x36   :  { %s44_s12 = sshll.u32 %s1090_s11, 4  ;;  %s65_s15 = sshll.u32 %s1091_s13, 4  ;;  %s45_s12 = int_to_ptr.vmem [resolvable:$true] %s44_s12  ;;  %s66_s15 = int_to_ptr.vmem [resolvable:$true] %s65_s15 }
  0x37   :  { %s987_s18 = scalar_lea.hbm %s1287_s2, 16 }
  0x38   :  { %p988_p10 = scmp.ne.s32.totalorder %s1287_s2, %s987_s18  ;;  %p991_p11 = scmp.lt.u32.totalorder %s987_s18, %s1287_s2 }
  0x3a   :  { %p993_p12 = pnand %p991_p11, %p988_p10 }
  0x3c   :  { %996 = shalt.err (!%p993_p12)
}
  0x3d   :  { %s997_s0 = scalar_lea.vmem %s45_s12, 16  ;;  %s1001_s14 = scalar_lea.vmem %s45_s12, 32 }
  0x3e   :  { %p998_p13 = scmp.ne.s32.totalorder %s45_s12, %s997_s0  ;;  %p1002_p0 = scmp.lt.s32.totalorder %s45_s12, %s45_s12 }
  0x3f   :  { %p1003_p1 = scmp.lt.s32.totalorder %s1001_s14, %s997_s0 }
  0x41   :  { %p1004_p2 = por %p1003_p1, %p1002_p0 }
  0x43   :  { %p1005_p3 = pnand %p1004_p2, %p998_p13 }
  0x45   :  { %1008 = shalt.err (!%p1005_p3)
}
  0x46   :  { %47 = dma.hbm_to_vmem [thread:$0]  %s1287_s2, 16, %s45_s12, [#allocation6]  }
  0x47   :  { %s1009_s26 = scalar_lea.hbm %s1289_s4, 2048 }
  0x48   :  { %p1010_p4 = scmp.ne.s32.totalorder %s1289_s4, %s1009_s26  ;;  %p1013_p5 = scmp.lt.u32.totalorder %s1009_s26, %s1289_s4 }
  0x4a   :  { %p1015_p6 = pnand %p1013_p5, %p1010_p4 }
  0x4c   :  { %1018 = shalt.err (!%p1015_p6)
}
  0x4d   :  { %s1019_s9 = scalar_lea.vmem %s66_s15, 2048  ;;  %p1024_p8 = scmp.lt.s32.totalorder %s66_s15, %s66_s15 }
  0x4e   :  { %p1020_p7 = scmp.ne.s32.totalorder %s66_s15, %s1019_s9  ;;  %p1025_p9 = scmp.lt.s32.totalorder %s1019_s9, %s1019_s9 }
  0x50   :  { %p1026_p10 = por %p1025_p9, %p1024_p8 }
  0x52   :  { %p1027_p11 = pnand %p1026_p10, %p1020_p7 }
  0x54   :  { %1030 = shalt.err (!%p1027_p11)
}
  0x55   :  { %71 = dma.hbm_to_vmem [thread:$0]  %s1289_s4, 2048, %s66_s15, [#allocation9], %s1086_s7, %s1086_s7, %s1087_s8  }
  0x56   :  { %s1092_s10 = smov [#allocation11]   ;;  %s1031_s16 = scalar_lea.hbm %s1290_s5, 64 }
  0x57   :  { %s77_s11 = sshll.u32 %s1092_s10, 4  ;;  %p1032_p12 = scmp.ne.s32.totalorder %s1290_s5, %s1031_s16  ;;  %s78_s11 = int_to_ptr.vmem [resolvable:$true] %s77_s11 }
  0x58   :  { %p1035_p13 = scmp.lt.u32.totalorder %s1031_s16, %s1290_s5 }
  0x5a   :  { %p1037_p0 = pnand %p1035_p13, %p1032_p12 }
  0x5c   :  { %1040 = shalt.err (!%p1037_p0)
}
  0x5d   :  { %s1041_s21 = scalar_lea.vmem %s78_s11, 64  ;;  %p1046_p2 = scmp.lt.s32.totalorder %s78_s11, %s78_s11 }
  0x5e   :  { %p1042_p1 = scmp.ne.s32.totalorder %s78_s11, %s1041_s21  ;;  %p1047_p3 = scmp.lt.s32.totalorder %s1041_s21, %s1041_s21 }
  0x60   :  { %p1048_p4 = por %p1047_p3, %p1046_p2 }
  0x62   :  { %p1049_p5 = pnand %p1048_p4, %p1042_p1 }
  0x64   :  { %1052 = shalt.err (!%p1049_p5)
}
  0x65   :  { %s1093_s4 = smov 32   ;;  %s1094_s7 = smov 2  }
  0x66   :  { %83 = dma.hbm_to_vmem [thread:$0]  %s1290_s5, 64, %s78_s11, [#allocation12], %s1093_s4, %s1093_s4, %s1094_s7  }
  0x67   :  { %1075 = dma.done.wait [#allocation3], 64  }
  0x68   :  { %1076 = vsyncadd [#allocation3], 4294967232 }
  0x69   :  { %1077 = dma.done.wait [#allocation6], 1040  }
  0x6a   :  { %1078 = vsyncadd [#allocation6], 4294966256 }
  0x6b   :  { %1079 = dma.done.wait [#allocation9], 4096  }
  0x6c   :  { %1080 = vsyncadd [#allocation9], 4294963200 }
  0x6d   :  { %1081 = dma.done.wait [#allocation12], 64  }
  0x6e   :  { %1082 = vsyncadd [#allocation12], 4294967232  ;;  %v1095_v0 = vmov 0.0   ;;  %vm1096_vm0 = vmmov 0   ;;  %v881_v1 = vld [vmem:[#allocation5] sm:$0xff]   ;;  %v882_v2 = vld [vmem:[#allocation5 + $0x8] sm:$0xff]   ;;  %v234_v40 = vlaneseq }
  0x6f   :  { %768 = vmatprep.subr.bf16.mxu0 %v1095_v0  ;;  %784 = vmatprep.mubr.msk.bf16.mxu0 %vm1096_vm0, %v1095_v0  ;;  %v883_v3 = vld [vmem:[#allocation5 + $0x10] sm:$0xff]   ;;  %v889_v4 = vld [vmem:[#allocation8] sm:$0xff]   ;;  %v884_v5 = vld [vmem:[#allocation5 + $0x18] sm:$0xff]   ;;  %s1097_s5 = smov [#allocation13]  }
  0x70   :  { %788 = vmatprep.subr.bf16.mxu1 %v1095_v0  ;;  %804 = vmatprep.mubr.msk.bf16.mxu1 %vm1096_vm0, %v1095_v0  ;;  %v890_v6 = vld [vmem:[#allocation8 + $0x8] sm:$0xff]   ;;  %v885_v7 = vld [vmem:[#allocation5 + $0x20] sm:$0xff]   ;;  %v891_v8 = vld [vmem:[#allocation8 + $0x10] sm:$0xff]   ;;  %v1258_v41 = vshrl.u32 %v234_v40, 7  ;;  %s670_s1 = sshll.u32 %s1097_s5, 4  ;;  %s671_s1 = int_to_ptr.vmem [resolvable:$true] %s670_s1 }
  0x71   :  { %769 = vmatpush3.bf16.msra.mxu0 %v881_v1  ;;  %789 = vmatpush3.bf16.msra.mxu1 %v889_v4  ;;  %v886_v9 = vld [vmem:[#allocation5 + $0x28] sm:$0xff]   ;;  %v892_v10 = vld [vmem:[#allocation8 + $0x18] sm:$0xff]   ;;  %v887_v11 = vld [vmem:[#allocation5 + $0x30] sm:$0xff]   ;;  %s1053_s0 = scalar_lea.vmem %s671_s1, 128  ;;  %p1058_p7 = scmp.lt.s32.totalorder %s671_s1, %s671_s1 }
  0x72   :  { %770 = vmatprep.subr.bf16.mxu0 %v1095_v0  ;;  %790 = vmatprep.subr.bf16.mxu1 %v1095_v0  ;;  %v893_v12 = vld [vmem:[#allocation8 + $0x20] sm:$0xff]   ;;  %v888_v13 = vld [vmem:[#allocation5 + $0x38] sm:$0xff]   ;;  %v894_v14 = vld [vmem:[#allocation8 + $0x28] sm:$0xff]   ;;  %v236_v42 = vsub.s32 0, %v1258_v41  ;;  %v346_v60 = vsub.s32 1, %v1258_v41  ;;  %p1054_p6 = scmp.ne.s32.totalorder %s671_s1, %s1053_s0  ;;  %p1059_p8 = scmp.lt.s32.totalorder %s1053_s0, %s1053_s0 }
  0x73   :  { %v103_v15 = vld [vmem:[#allocation2] sm:$0xf]  ;;  %v895_v16 = vld [vmem:[#allocation8 + $0x30] sm:$0xff]   ;;  %v897_v18 = vld [vmem:[#allocation10] sm:$0xff]  }
  0x74   :  { %v896_v17 = vld [vmem:[#allocation8 + $0x38] sm:$0xff]   ;;  %v898_v19 = vld [vmem:[#allocation10 + $0x8] sm:$0xff]   ;;  %v899_v20 = vld [vmem:[#allocation10 + $0x10] sm:$0xff]   ;;  %p1060_p9 = por %p1059_p8, %p1058_p7 }
  0x75   :  { %771 = vmatpush3.bf16.msra.mxu0 %v882_v2  ;;  %791 = vmatpush3.bf16.msra.mxu1 %v890_v6  ;;  %v900_v21 = vld [vmem:[#allocation10 + $0x18] sm:$0xff]   ;;  %v901_v22 = vld [vmem:[#allocation10 + $0x20] sm:$0xff]   ;;  %v902_v23 = vld [vmem:[#allocation10 + $0x28] sm:$0xff]  }
  0x76   :  { %772 = vmatprep.subr.bf16.mxu0 %v1095_v0  ;;  %792 = vmatprep.subr.bf16.mxu1 %v1095_v0  ;;  %v682_v24 = vld [vmem:[#allocation7] ss:$0 sm:$0xff]  ;;  %v903_v32 = vld [vmem:[#allocation10 + $0x30] sm:$0xff]   ;;  %v905_v34 = vld [vmem:[#allocation8 + $0x40] sm:$0xff]   ;;  %p1061_p10 = pnand %p1060_p9, %p1054_p6 }
  0x77   :  { %v904_v33 = vld [vmem:[#allocation10 + $0x38] sm:$0xff]   ;;  %v906_v35 = vld [vmem:[#allocation8 + $0x48] sm:$0xff]   ;;  %v907_v36 = vld [vmem:[#allocation8 + $0x50] sm:$0xff]  }
  0x78   :  { %v908_v37 = vld [vmem:[#allocation8 + $0x58] sm:$0xff]   ;;  %v909_v38 = vld [vmem:[#allocation8 + $0x60] sm:$0xff]   ;;  %v910_v39 = vld [vmem:[#allocation8 + $0x68] sm:$0xff]  }
  0x79   :  { %773 = vmatpush3.bf16.msra.mxu0 %v883_v3  ;;  %793 = vmatpush3.bf16.msra.mxu1 %v891_v8  ;;  %v233_v43 = vld [vmem:[#allocation11] sm:$0x3]  ;;  %v911_v52 = vld [vmem:[#allocation8 + $0x70] sm:$0xff]   ;;  %v912_v53 = vld [vmem:[#allocation8 + $0x78] sm:$0xff]  }
  0x7a   :  { %774 = vmatprep.subr.bf16.mxu0 %v1095_v0  ;;  %794 = vmatprep.subr.bf16.mxu1 %v1095_v0  ;;  %v237_v44 = vrot.slane %v233_v43, %v236_v42  ;;  %v913_v54 = vld [vmem:[#allocation10 + $0x40] sm:$0xff]   ;;  %v914_v55 = vld [vmem:[#allocation10 + $0x48] sm:$0xff]   ;;  %v915_v56 = vld [vmem:[#allocation10 + $0x50] sm:$0xff]   ;;  %v347_v61 = vrot.slane %v233_v43, %v346_v60 }
  0x7b   :  { %v916_v57 = vld [vmem:[#allocation10 + $0x58] sm:$0xff]   ;;  %v917_v58 = vld [vmem:[#allocation10 + $0x60] sm:$0xff]   ;;  %v918_v59 = vld [vmem:[#allocation10 + $0x68] sm:$0xff]  }
  0x7c   :  { %v920_v8 = vld [vmem:[#allocation10 + $0x78] sm:$0xff]  }
  0x7d   :  { %775 = vmatpush3.bf16.msra.mxu0 %v884_v5  ;;  %795 = vmatpush3.bf16.msra.mxu1 %v892_v10 }
  0x7e   :  { %776 = vmatprep.subr.bf16.mxu0 %v1095_v0  ;;  %796 = vmatprep.subr.bf16.mxu1 %v1095_v0 }
  0x81   :  { %777 = vmatpush3.bf16.msra.mxu0 %v885_v7  ;;  %797 = vmatpush3.bf16.msra.mxu1 %v893_v12  ;;  %v919_v7 = vld [vmem:[#allocation10 + $0x70] sm:$0xff]  }
  0x82   :  { %778 = vmatprep.subr.bf16.mxu0 %v1095_v0  ;;  %798 = vmatprep.subr.bf16.mxu1 %v1095_v0 }
  0x85   :  { %779 = vmatpush3.bf16.msra.mxu0 %v886_v9  ;;  %799 = vmatpush3.bf16.msra.mxu1 %v894_v14  ;;  %v457_v9 = vld [vmem:[#allocation11 + $0x2] sm:$0x3] }
  0x86   :  { %780 = vmatprep.subr.bf16.mxu0 %v1095_v0  ;;  %800 = vmatprep.subr.bf16.mxu1 %v1095_v0  ;;  %v461_v10 = vrot.slane %v457_v9, %v236_v42 }
  0x89   :  { %781 = vmatpush3.bf16.msra.mxu0 %v887_v11  ;;  %801 = vmatpush3.bf16.msra.mxu1 %v895_v16 }
  0x8a   :  { %782 = vmatprep.subr.bf16.mxu0 %v1095_v0  ;;  %802 = vmatprep.subr.bf16.mxu1 %v1095_v0 }
  0x8d   :  { %783 = vmatpush3.bf16.msra.mxu0 %v888_v13  ;;  %803 = vmatpush3.bf16.msra.mxu1 %v896_v17 }
  0x8e   :  { %808 = vmatprep.subr.bf16.mxu0 %v1095_v0  ;;  %828 = vmatprep.subr.bf16.mxu1 %v1095_v0 }
  0x90   :  { %785 = vmatmul.mubr.bf16.vlgmr.msra.gmra.mrb[0].mxu0 %v103_v15 }
  0x91   :  { %824 = vmatprep.mubr.msk.bf16.mxu0 %vm1096_vm0, %v1095_v0  ;;  %809 = vmatpush3.bf16.msra.mxu0 %v897_v18  ;;  %v572_v18 = vrot.slane %v457_v9, %v346_v60 }
  0x92   :  { %810 = vmatprep.subr.bf16.mxu0 %v1095_v0 }
  0x95   :  { %811 = vmatpush3.bf16.msra.mxu0 %v898_v19 }
  0x96   :  { %812 = vmatprep.subr.bf16.mxu0 %v1095_v0 }
  0x99   :  { %813 = vmatpush3.bf16.msra.mxu0 %v899_v20 }
  0x9a   :  { %814 = vmatprep.subr.bf16.mxu0 %v1095_v0 }
  0x9d   :  { %815 = vmatpush3.bf16.msra.mxu0 %v900_v21 }
  0x9e   :  { %816 = vmatprep.subr.bf16.mxu0 %v1095_v0 }
  0xa1   :  { %817 = vmatpush3.bf16.msra.mxu0 %v901_v22 }
  0xa2   :  { %818 = vmatprep.subr.bf16.mxu0 %v1095_v0 }
  0xa5   :  { %819 = vmatpush3.bf16.msra.mxu0 %v902_v23 }
  0xa6   :  { %820 = vmatprep.subr.bf16.mxu0 %v1095_v0 }
  0xa9   :  { %821 = vmatpush3.bf16.msra.mxu0 %v903_v32 }
  0xaa   :  { %822 = vmatprep.subr.bf16.mxu0 %v1095_v0 }
  0xad   :  { %823 = vmatpush3.bf16.msra.mxu0 %v904_v33 }
  0xae   :  { %848 = vmatprep.subr.bf16.mxu0 %v1095_v0 }
 0x163   :  { %v209_v25 = vpop.f32.mrb[0].mxu0 }
 0x164   :  { %v210_v26 = vadd.f32 %v682_v24, %v209_v25  ;;  %v786_v27 = vpop.f32.mrb[1].mxu0 }
 0x165   :  { %v212_v28 = vpop.f32.mrb[2].mxu0 }
 0x166   :  { %v1244_v29 = vmax.f32 %v210_v26, 0.0  ;;  %v787_v30 = vpop.f32.mrb[3].mxu0 }
 0x168   :  { %v216_v31 = vpack.c.bf16 %v1244_v29, %v1244_v29 }
 0x16a   :  { %805 = vmatmul.mubr.bf16.vlgmr.msra.gmra.mrb[0].mxu1 %v216_v31 }
 0x16b   :  { %844 = vmatprep.mubr.msk.bf16.mxu1 %vm1096_vm0, %v1095_v0  ;;  %829 = vmatpush3.bf16.msra.mxu1 %v905_v34 }
 0x16c   :  { %830 = vmatprep.subr.bf16.mxu1 %v1095_v0 }
 0x16f   :  { %831 = vmatpush3.bf16.msra.mxu1 %v906_v35 }
 0x170   :  { %832 = vmatprep.subr.bf16.mxu1 %v1095_v0 }
 0x173   :  { %833 = vmatpush3.bf16.msra.mxu1 %v907_v36 }
 0x174   :  { %834 = vmatprep.subr.bf16.mxu1 %v1095_v0 }
 0x177   :  { %835 = vmatpush3.bf16.msra.mxu1 %v908_v37 }
 0x178   :  { %836 = vmatprep.subr.bf16.mxu1 %v1095_v0 }
 0x17b   :  { %837 = vmatpush3.bf16.msra.mxu1 %v909_v38 }
 0x17c   :  { %838 = vmatprep.subr.bf16.mxu1 %v1095_v0 }
 0x17f   :  { %839 = vmatpush3.bf16.msra.mxu1 %v910_v39 }
 0x180   :  { %840 = vmatprep.subr.bf16.mxu1 %v1095_v0 }
 0x183   :  { %841 = vmatpush3.bf16.msra.mxu1 %v911_v52 }
 0x184   :  { %842 = vmatprep.subr.bf16.mxu1 %v1095_v0 }
 0x187   :  { %843 = vmatpush3.bf16.msra.mxu1 %v912_v53 }
 0x23d   :  { %v320_v45 = vpop.f32.mrb[0].mxu1 }
 0x23e   :  { %v321_v46 = vadd.f32 %v320_v45, %v237_v44  ;;  %v806_v47 = vpop.f32.mrb[1].mxu1 }
 0x23f   :  { %v323_v48 = vpop.f32.mrb[2].mxu1 }
 0x240   :  { %v326_v49 = vmax.f32 %v321_v46, 0.0  ;;  %v807_v50 = vpop.f32.mrb[3].mxu1 }
 0x242   :  { %v327_v51 = vpack.c.bf16 %v326_v49, %v326_v49 }
 0x244   :  { %825 = vmatmul.mubr.bf16.vlgmr.msra.gmra.mrb[4].mxu0 %v327_v51 }
 0x245   :  { %864 = vmatprep.mubr.msk.bf16.mxu0 %vm1096_vm0, %v1095_v0  ;;  %849 = vmatpush3.bf16.msra.mxu0 %v913_v54 }
 0x246   :  { %850 = vmatprep.subr.bf16.mxu0 %v1095_v0 }
 0x249   :  { %851 = vmatpush3.bf16.msra.mxu0 %v914_v55 }
 0x24a   :  { %852 = vmatprep.subr.bf16.mxu0 %v1095_v0 }
 0x24d   :  { %853 = vmatpush3.bf16.msra.mxu0 %v915_v56 }
 0x24e   :  { %854 = vmatprep.subr.bf16.mxu0 %v1095_v0 }
 0x251   :  { %855 = vmatpush3.bf16.msra.mxu0 %v916_v57 }
 0x252   :  { %856 = vmatprep.subr.bf16.mxu0 %v1095_v0 }
 0x255   :  { %857 = vmatpush3.bf16.msra.mxu0 %v917_v58 }
 0x256   :  { %858 = vmatprep.subr.bf16.mxu0 %v1095_v0 }
 0x259   :  { %859 = vmatpush3.bf16.msra.mxu0 %v918_v59 }
 0x25a   :  { %860 = vmatprep.subr.bf16.mxu0 %v1095_v0 }
 0x25d   :  { %861 = vmatpush3.bf16.msra.mxu0 %v919_v7 }
 0x25e   :  { %862 = vmatprep.subr.bf16.mxu0 %v1095_v0 }
 0x261   :  { %863 = vmatpush3.bf16.msra.mxu0 %v920_v8 }
 0x317   :  { %v430_v62 = vpop.f32.mrb[4].mxu0 }
 0x318   :  { %v431_v63 = vadd.f32 %v430_v62, %v347_v61  ;;  %v826_v1 = vpop.f32.mrb[5].mxu0 }
 0x319   :  { %v433_v2 = vpop.f32.mrb[6].mxu0 }
 0x31a   :  { %v436_v3 = vadd.f32 %v431_v63, %v1244_v29  ;;  %v827_v4 = vpop.f32.mrb[7].mxu0 }
 0x31c   :  { %v437_v5 = vmax.f32 %v436_v3, 0.0 }
 0x31e   :  { %v438_v6 = vpack.c.bf16 %v437_v5, %v437_v5 }
 0x320   :  { %845 = vmatmul.mubr.bf16.vlgmr.msra.gmra.mrb[4].mxu1 %v438_v6 }
 0x3f3   :  { %v544_v11 = vpop.f32.mrb[4].mxu1 }
 0x3f4   :  { %v545_v12 = vadd.f32 %v544_v11, %v461_v10  ;;  %v846_v13 = vpop.f32.mrb[5].mxu1 }
 0x3f5   :  { %v547_v14 = vpop.f32.mrb[6].mxu1 }
 0x3f6   :  { %v550_v15 = vmax.f32 %v545_v12, 0.0  ;;  %v847_v16 = vpop.f32.mrb[7].mxu1 }
 0x3f8   :  { %v551_v17 = vpack.c.bf16 %v550_v15, %v550_v15 }
 0x3fa   :  { %865 = vmatmul.mubr.bf16.vlgmr.msra.gmra.mrb[8].mxu0 %v551_v17 }
 0x4cd   :  { %v655_v19 = vpop.f32.mrb[8].mxu0 }
 0x4ce   :  { %v656_v20 = vadd.f32 %v655_v19, %v572_v18  ;;  %v866_v21 = vpop.f32.mrb[9].mxu0 }
 0x4cf   :  { %v658_v22 = vpop.f32.mrb[10].mxu0 }
 0x4d0   :  { %v661_v0 = vadd.f32 %v656_v20, %v437_v5  ;;  %v867_v23 = vpop.f32.mrb[11].mxu0 }
 0x4d2   :  { %v662_v24 = vmax.f32 %v661_v0, 0.0 }
 0x4d4   :  { %663 = vst [vmem:[#allocation13] sm:$0xff] %v662_v24 }
 0x4d5   :  { %1064 = shalt.err (!%p1061_p10)
}
 0x4d6   :  { %s1065_s23 = scalar_lea.hbm %s1291_s6, 128 }
 0x4d7   :  { %p1066_p11 = scmp.ne.s32.totalorder %s1291_s6, %s1065_s23  ;;  %p1069_p12 = scmp.lt.u32.totalorder %s1065_s23, %s1291_s6 }
 0x4d9   :  { %p1071_p13 = pnand %p1069_p12, %p1066_p11 }
 0x4db   :  { %1074 = shalt.err (!%p1071_p13)
}
 0x4dc   :  { %673 = dma.vmem_to_hbm [thread:$0]  %s671_s1, 128, %s1291_s6, [#allocation4]  }
 0x4dd   :  { %1083 = dma.done.wait [#allocation4], 128  }
 0x4de   :  { %1084 = vsyncadd [#allocation4], 4294967168 }
 0x4df   :  { %677 = vsyncpa [#allocation3], 1 }
 0x4e0   :  { %678 = vsyncpa [#allocation6], 1 }
 0x4e1   :  { %679 = vsyncpa [#allocation9], 1 }
 0x4e2   :  { %680 = vsyncpa [#allocation12], 1 }
 0x4e3   :  { %681 = vsyncpa [#allocation4], 1 }

</bundles_post_ra>
